<compile_context>
chip_gen: v5e
topology: v5e:2x2
jax: 0.10.0
libtpu: 0.0.40
codegen_flags: <defaults>
</compile_context>

<pallas_src>
import math

import jax
import jax.numpy as jnp
from jax.experimental import pallas as pl
from jax.experimental.pallas import tpu as pltpu


def _round_up(x, m):
    return ((x + m - 1) // m) * m


# -----------------------------------------------------------------------------
# Pallas kernel: tiled GEMM (patches @ weight) + bias
# -----------------------------------------------------------------------------
def _patch_embed_kernel(p_ref, w_ref, b_ref, o_ref):
    # p_ref: (tm, K) patch tile, w_ref: (K, Np) full weight, b_ref: (1, Np) f32 bias
    acc = jnp.dot(p_ref[...], w_ref[...], preferred_element_type=jnp.float32)
    o_ref[...] = (acc + b_ref[...]).astype(o_ref.dtype)


def _patch_embed_gemm(patches, weight_kn, bias, *, tm=256, out_dtype=None):
    """patches: (M, K), weight_kn: (K, N), bias: (N,) -> (M, N)."""
    M, K = patches.shape
    N = weight_kn.shape[1]
    if out_dtype is None:
        out_dtype = patches.dtype

    # --- lane-dense output: pad N (embed_dims) to a multiple of 128 ----------
    N_pad = _round_up(N, 128)
    if N_pad != N:
        weight_kn = jnp.pad(weight_kn, ((0, 0), (0, N_pad - N)))
        bias = jnp.pad(bias, (0, N_pad - N))
    bias2d = bias.astype(jnp.float32).reshape(1, N_pad)  # cast once, not per step

    # --- choose the M tile -----------------------------------------------------
    itemsize = jnp.dtype(patches.dtype).itemsize

    def _vmem_bytes(t):
        # double-buffered patch tile + weight + output tile (bias negligible)
        return 2 * (t * K + K * N_pad + t * N_pad) * itemsize

    tm_eff = max(8, _round_up(tm, 8))
    # keep the per-step working set well inside the v7x 64 MiB / 32 MiB scoped VMEM
    while tm_eff > 8 and _vmem_bytes(tm_eff) > 24 * 1024 * 1024:
        tm_eff //= 2
    # don't use a tile bigger than (padded) M itself
    tm_eff = min(tm_eff, _round_up(M, 8))

    # --- pad M up to the tile (slice after) instead of asserting --------------
    M_pad = _round_up(M, tm_eff)
    if M_pad != M:
        patches = jnp.pad(patches, ((0, M_pad - M), (0, 0)))

    grid = (M_pad // tm_eff,)
    flops = 2 * M_pad * K * N_pad
    bytes_accessed = (M_pad * K + K * N_pad) * itemsize + M_pad * N_pad * jnp.dtype(out_dtype).itemsize

    out = pl.pallas_call(
        _patch_embed_kernel,
        out_shape=jax.ShapeDtypeStruct((M_pad, N_pad), out_dtype),
        grid_spec=pltpu.PrefetchScalarGridSpec(
            num_scalar_prefetch=0,
            grid=grid,
            in_specs=[
                pl.BlockSpec((tm_eff, K), lambda i: (i, 0)),    # patch row tile
                pl.BlockSpec((K, N_pad), lambda i: (0, 0)),     # full weight (constant -> DMA'd once)
                pl.BlockSpec((1, N_pad), lambda i: (0, 0)),     # f32 bias row (constant)
            ],
            out_specs=pl.BlockSpec((tm_eff, N_pad), lambda i: (i, 0)),
        ),
        compiler_params=pltpu.CompilerParams(
            dimension_semantics=("parallel",),          # shard M over both TCs on v7x
            allow_input_fusion=[True, False, False],    # fuse im2col transpose/reshape into input
        ),
        cost_estimate=pl.CostEstimate(
            flops=flops, transcendentals=0, bytes_accessed=bytes_accessed
        ),
    )(patches, weight_kn, bias2d)

    # strip M / N padding
    return out[:M, :N]


# -----------------------------------------------------------------------------
# PatchEmbed wrapper (glue in plain JAX)
# -----------------------------------------------------------------------------
def adaptive_pad_corner(x, kernel_size, stride, dilation=(1, 1)):
    """Corner-mode adaptive padding (zero pad bottom/right), x is NCHW."""
    _, _, H, W = x.shape
    kh, kw = kernel_size
    sh, sw = stride
    out_h = math.ceil(H / sh)
    out_w = math.ceil(W / sw)
    pad_h = max((out_h - 1) * sh + (kh - 1) * dilation[0] + 1 - H, 0)
    pad_w = max((out_w - 1) * sw + (kw - 1) * dilation[1] + 1 - W, 0)
    if pad_h > 0 or pad_w > 0:
        x = jnp.pad(x, ((0, 0), (0, 0), (0, pad_h), (0, pad_w)))
    return x


def patch_embed_forward(x, conv_weight, conv_bias, *, kernel_size, stride,
                        compute_dtype=None, tm=256):
    """Mirror of PatchEmbed.forward (padding='corner', norm_cfg=None).

    Args:
      x: (B, C, H, W) NCHW input (matching PyTorch).
      conv_weight: (embed_dims, C, kh, kw) — PyTorch Conv2d weight layout.
      conv_bias: (embed_dims,)
      compute_dtype: optional MXU input dtype (e.g. jnp.bfloat16) — accumulation
        stays f32; output keeps x.dtype.
    Returns:
      (y, out_size) with y: (B, out_h*out_w, embed_dims).
    """
    kh, kw = kernel_size
    sh, sw = stride
    assert (kh, kw) == (sh, sw), "patch embed uses kernel_size == stride"

    # adaptive 'corner' padding
    x = adaptive_pad_corner(x, kernel_size, stride)
    B, C, H, W = x.shape
    out_h, out_w = H // sh, W // sw

    # im2col for non-overlapping patches:
    # (B, C, out_h, kh, out_w, kw) -> (B, out_h, out_w, C, kh, kw)
    # TODO(synk): express this gather directly in the BlockSpec to fully remove
    # the host-side transpose; allow_input_fusion covers the common case.
    patches = x.reshape(B, C, out_h, kh, out_w, kw)
    patches = patches.transpose(0, 2, 4, 1, 3, 5)
    patches = patches.reshape(B * out_h * out_w, C * kh * kw)  # (M, K)

    # conv weight (N, C, kh, kw) -> (K, N)
    N = conv_weight.shape[0]
    weight_kn = conv_weight.reshape(N, C * kh * kw).T  # (K, N)

    if compute_dtype is not None:
        patches = patches.astype(compute_dtype)
        weight_kn = weight_kn.astype(compute_dtype)

    y = _patch_embed_gemm(patches, weight_kn, conv_bias, tm=tm,
                          out_dtype=x.dtype)  # (M, N)
    y = y.reshape(B, out_h * out_w, N)
    return y, (out_h, out_w)


# -----------------------------------------------------------------------------
# Example / self-check
# -----------------------------------------------------------------------------
if __name__ == "__main__":
    # Small shapes consistent with the module: B=2, C=4, H=W=16,
    # kernel=stride=4 -> out 4x4=16 patches, embed_dims=32.
    B, C, H, W = 2, 4, 16, 16
    kernel_size = (4, 4)
    stride = (4, 4)
    embed_dims = 32

    key = jax.random.PRNGKey(0)
    kx, kw_, kb = jax.random.split(key, 3)

    x = jax.random.normal(kx, (B, C, H, W), dtype=jnp.float32)
    # deterministic synthetic conv parameters (PyTorch Conv2d weight layout)
    conv_weight = (
        jax.random.normal(kw_, (embed_dims, C, kernel_size[0], kernel_size[1]),
                          dtype=jnp.float32)
        * 0.02
    )
    conv_bias = jax.random.normal(kb, (embed_dims,), dtype=jnp.float32) * 0.01

    y, out_size = patch_embed_forward(
        x, conv_weight, conv_bias, kernel_size=kernel_size, stride=stride
    )
    y = jax.block_until_ready(y)

    # Reference check (plain JAX im2col GEMM) — same math as torch Conv2d with
    # kernel_size == stride, padding 0.
    xp = adaptive_pad_corner(x, kernel_size, stride)
    out_h, out_w = out_size
    ref_patches = xp.reshape(B, C, out_h, kernel_size[0], out_w, kernel_size[1])
    ref_patches = ref_patches.transpose(0, 2, 4, 1, 3, 5).reshape(
        B * out_h * out_w, C * kernel_size[0] * kernel_size[1]
    )
    ref = ref_patches @ conv_weight.reshape(embed_dims, -1).T + conv_bias
    ref = ref.reshape(B, out_h * out_w, embed_dims)

    assert y.shape == (B, out_h * out_w, embed_dims)
    assert out_size == (H // stride[0], W // stride[1])
    assert jnp.allclose(y, ref, atol=1e-4, rtol=1e-4)

    # norm_cfg is None in this config -> no BatchNorm branch needed.
    print("KERNEL_OK")
</pallas_src>

<mosaic_0001>
module attributes {stable_mosaic.version = 11 : i64} {
  func.func @_patch_embed_kernel(%arg0: i32, %arg1: memref<32x64xf32, #tpu.memory_space<vmem>>, %arg2: memref<64x128xf32, #tpu.memory_space<vmem>>, %arg3: memref<1x128xf32, #tpu.memory_space<vmem>>, %arg4: memref<32x128xf32, #tpu.memory_space<vmem>>) attributes {dimension_semantics = [#tpu.dimension_semantics<parallel>], iteration_bounds = array<i64: 1>, scalar_prefetch = 0 : i64, scratch_operands = 0 : i64, tpu.core_type = #tpu.core_type<tc>, window_params = [{transform_indices = @transform_0, window_bounds = array<i64: 32, 64>}, {pipeline_mode = #tpu.pipeline_mode<synchronous>, transform_indices = @transform_1, window_bounds = array<i64: 64, 128>}, {pipeline_mode = #tpu.pipeline_mode<synchronous>, transform_indices = @transform_2, window_bounds = array<i64: 1, 128>}, {transform_indices = @transform_3, window_bounds = array<i64: 32, 128>}]} {
    %c0 = arith.constant 0 : index
    %c0_0 = arith.constant 0 : index
    %0 = vector.load %arg1[%c0, %c0_0] : memref<32x64xf32, #tpu.memory_space<vmem>>, vector<32x64xf32>
    %c0_1 = arith.constant 0 : index
    %c0_2 = arith.constant 0 : index
    %1 = vector.load %arg2[%c0_1, %c0_2] : memref<64x128xf32, #tpu.memory_space<vmem>>, vector<64x128xf32>
    %cst = arith.constant dense<0.000000e+00> : vector<32x128xf32>
    %2 = tpu.matmul %0, %1, %cst {dimension_numbers = #tpu.dot_dimension_numbers<[1], [0], [0], [1], [0, 0, 1, 1], [], []>} : vector<32x64xf32>, vector<64x128xf32>, vector<32x128xf32> -> vector<32x128xf32>
    %c0_3 = arith.constant 0 : index
    %c0_4 = arith.constant 0 : index
    %3 = vector.load %arg3[%c0_3, %c0_4] : memref<1x128xf32, #tpu.memory_space<vmem>>, vector<1x128xf32>
    %4 = vector.broadcast %3 : vector<1x128xf32> to vector<32x128xf32>
    %5 = arith.addf %2, %4 : vector<32x128xf32>
    %c0_5 = arith.constant 0 : index
    %c0_6 = arith.constant 0 : index
    %6 = vector.load %arg4[%c0_5, %c0_6] : memref<32x128xf32, #tpu.memory_space<vmem>>, vector<32x128xf32>
    tpu.vector_store %arg4[%c0_5, %c0_6], %5 {strides = array<i32>} : memref<32x128xf32, #tpu.memory_space<vmem>>, vector<32x128xf32>,
    return
  }
  func.func @transform_0(%arg0: i32) -> (i32, i32) {
    %c0_i32 = arith.constant 0 : i32
    %c0_i32_0 = arith.constant 0 : i32
    return %arg0, %c0_i32 : i32, i32
  }
  func.func @transform_1(%arg0: i32) -> (i32, i32) {
    %c0_i32 = arith.constant 0 : i32
    %c0_i32_0 = arith.constant 0 : i32
    %c0_i32_1 = arith.constant 0 : i32
    return %c0_i32, %c0_i32_0 : i32, i32
  }
  func.func @transform_2(%arg0: i32) -> (i32, i32) {
    %c0_i32 = arith.constant 0 : i32
    %c0_i32_0 = arith.constant 0 : i32
    %c0_i32_1 = arith.constant 0 : i32
    return %c0_i32, %c0_i32_0 : i32, i32
  }
  func.func @transform_3(%arg0: i32) -> (i32, i32) {
    %c0_i32 = arith.constant 0 : i32
    %c0_i32_0 = arith.constant 0 : i32
    return %arg0, %c0_i32 : i32, i32
  }
}

</mosaic_0001>

<bundles_post_ra>
// kernel: tpu_custom_call.1
= control target key start
LH: loop header
LB: loop body
LE: loop exit
PB: predicated region body
PF: predicated region fallthrough
CT: control target
= control target key end

     0   :  { %8 = vsyncpa [#allocation3], 0  ;;  %s287_s0 = inlined_call_operand.hbm [shape: f32[32,64], index: 0, kind: input, shape index: {}]   ;;  %s288_s1 = inlined_call_operand.hbm [shape: f32[64,128], index: 1, kind: input, shape index: {}]   ;;  %s289_s2 = inlined_call_operand.vmem [shape: f32[1,128], index: 2, kind: input, shape index: {}]   ;;  %s290_s3 = inlined_call_operand.hbm [shape: f32[32,128], index: 3, kind: output, shape index: {}]  }
   0x1   :  { %9 = vsyncpa [#allocation6], 0 }
   0x2   :  { %10 = vsyncpa [#allocation4], 0  ;;  %s15_s14 = sshll.u32 %s287_s0, 4  ;;  %s241_s15 = smov [#allocation2]   ;;  %s16_s14 = int_to_ptr.hbm [resolvable:$true] %s15_s14 }
   0x3   :  { %s17_s16 = sshll.u32 %s241_s15, 4  ;;  %s28_s19 = sshll.u32 %s288_s1, 4  ;;  %s18_s16 = int_to_ptr.vmem [resolvable:$true] %s17_s16  ;;  %s29_s19 = int_to_ptr.hbm [resolvable:$true] %s28_s19 }
   0x4   :  { %s242_s20 = smov 128   ;;  %s243_s21 = smov 8  }
   0x5   :  { %23 = dma.hbm_to_vmem [thread:$0]  %s16_s14, 512, %s18_s16, [#allocation3], %s242_s20, %s242_s20, %s243_s21  }
   0x6   :  { %s244_s22 = smov [#allocation5]  }
   0x7   :  { %s30_s23 = sshll.u32 %s244_s22, 4  ;;  %s31_s23 = int_to_ptr.vmem [resolvable:$true] %s30_s23 }
   0x8   :  { %36 = dma.hbm_to_vmem [thread:$0]  %s29_s19, 1024, %s31_s23, [#allocation6], %s242_s20, %s242_s20, %s243_s21  }
   0x9   :  { %235 = dma.done.wait [#allocation3], 512  }
   0xa   :  { %236 = vsyncadd [#allocation3], 4294966784 }
   0xb   :  { %237 = dma.done.wait [#allocation6], 1024  }
   0xc   :  { %238 = vsyncadd [#allocation6], 4294966272  ;;  %v58_v0 = vld [vmem:[#allocation5 + $0x38] sm:$0xff]  ;;  %v57_v1 = vld [vmem:[#allocation5 + $0x30] sm:$0xff]  ;;  %vm63_vm0 = vcmask 523264   ;;  %s245_s24 = smov [#allocation7]  }
   0xd   :  { %134 = vmatpush.msra.mxu2 %v58_v0  ;;  %135 = vmatpush.msra.mxu3 %v58_v0  ;;  %v56_v2 = vld [vmem:[#allocation5 + $0x28] sm:$0xff]  ;;  %v55_v3 = vld [vmem:[#allocation5 + $0x20] sm:$0xff]  ;;  %v54_v4 = vld [vmem:[#allocation5 + $0x18] sm:$0xff]  ;;  %s113_s25 = sshll.u32 %s245_s24, 4  ;;  %s115_s28 = sshll.u32 %s290_s3, 4  ;;  %s114_s25 = int_to_ptr.vmem [resolvable:$true] %s113_s25  ;;  %s116_s28 = int_to_ptr.hbm [resolvable:$true] %s115_s28 }
   0xe   :  { %84 = vmatpush.msra.mxu0 %v58_v0  ;;  %133 = vmatpush.msra.mxu1 %v58_v0  ;;  %v53_v5 = vld [vmem:[#allocation5 + $0x10] sm:$0xff]  ;;  %v52_v6 = vld [vmem:[#allocation5 + $0x8] sm:$0xff]  ;;  %v51_v7 = vld [vmem:[#allocation5] sm:$0xff] }
   0xf   :  { %137 = vmatpush.msra.mxu2 %v57_v1  ;;  %138 = vmatpush.msra.mxu3 %v57_v1  ;;  %v49_v8 = vld [vmem:[#allocation2 + $0x10] sm:$0xff]  ;;  %v50_v9 = vld [vmem:[#allocation2 + $0x18] sm:$0xff]  ;;  %v47_v10 = vld [vmem:[#allocation2] sm:$0xff] }
  0x10   :  { %85 = vmatpush.msra.mxu0 %v57_v1  ;;  %136 = vmatpush.msra.mxu1 %v57_v1  ;;  %v48_v11 = vld [vmem:[#allocation2 + $0x8] sm:$0xff]  ;;  %v162_v12 = vld [vmem:[%s289_s2] ss:$0 sm:$0xff] }
  0x11   :  { %140 = vmatpush.msra.mxu2 %v56_v2  ;;  %141 = vmatpush.msra.mxu3 %v56_v2 }
  0x12   :  { %86 = vmatpush.msra.mxu0 %v56_v2  ;;  %139 = vmatpush.msra.mxu1 %v56_v2 }
  0x13   :  { %143 = vmatpush.msra.mxu2 %v55_v3  ;;  %144 = vmatpush.msra.mxu3 %v55_v3 }
  0x14   :  { %87 = vmatpush.msra.mxu0 %v55_v3  ;;  %142 = vmatpush.msra.mxu1 %v55_v3 }
  0x15   :  { %146 = vmatpush.msra.mxu2 %v54_v4  ;;  %147 = vmatpush.msra.mxu3 %v54_v4 }
  0x16   :  { %88 = vmatpush.msra.mxu0 %v54_v4  ;;  %145 = vmatpush.msra.mxu1 %v54_v4 }
  0x17   :  { %149 = vmatpush.msra.mxu2 %v53_v5  ;;  %150 = vmatpush.msra.mxu3 %v53_v5 }
  0x18   :  { %89 = vmatpush.msra.mxu0 %v53_v5  ;;  %148 = vmatpush.msra.mxu1 %v53_v5 }
  0x19   :  { %152 = vmatpush.msra.mxu2 %v52_v6  ;;  %153 = vmatpush.msra.mxu3 %v52_v6 }
  0x1a   :  { %90 = vmatpush.msra.mxu0 %v52_v6  ;;  %151 = vmatpush.msra.mxu1 %v52_v6 }
  0x1b   :  { %155 = vmatpush.msra.mxu2 %v51_v7  ;;  %156 = vmatpush.msra.mxu3 %v51_v7 }
  0x1c   :  { %131 = vmatmul.msk.f32.vlgmr.msra.gmra.mxu2 %vm63_vm0, %v49_v8  ;;  %132 = vmatmul.msk.f32.vlgmr.msra.gmra.mxu3 %vm63_vm0, %v50_v9 }
  0x1d   :  { %91 = vmatpush.msra.mxu0 %v51_v7  ;;  %154 = vmatpush.msra.mxu1 %v51_v7 }
  0x1e   :  { %129 = vmatmul.msk.f32.vlgmr.msra.gmra.mxu0 %vm63_vm0, %v47_v10  ;;  %130 = vmatmul.msk.f32.vlgmr.msra.gmra.mxu1 %vm63_vm0, %v48_v11 }
  0x9b   :  { %v93_v13 = vpop.f32.mrf.mxu0  ;;  %v96_v14 = vpop.f32.mrf.mxu1 }
  0x9c   :  { %v94_v15 = vadd.f32 %v162_v12, %v93_v13  ;;  %v97_v16 = vadd.f32 %v162_v12, %v96_v14 }
  0x9e   :  { %105 = vst [vmem:[#allocation7] sm:$0xff] %v94_v15 }
  0x9f   :  { %106 = vst [vmem:[#allocation7 + $0x8] sm:$0xff] %v97_v16  ;;  %v99_v17 = vpop.f32.mrf.mxu2  ;;  %v102_v18 = vpop.f32.mrf.mxu3 }
  0xa0   :  { %v100_v19 = vadd.f32 %v162_v12, %v99_v17  ;;  %v103_v20 = vadd.f32 %v162_v12, %v102_v18 }
  0xa2   :  { %107 = vst [vmem:[#allocation7 + $0x10] sm:$0xff] %v100_v19 }
  0xa3   :  { %108 = vst [vmem:[#allocation7 + $0x18] sm:$0xff] %v103_v20 }
  0xa4   :  { %121 = dma.vmem_to_hbm [thread:$0]  %s114_s25, 512, %s116_s28, [#allocation4], %s242_s20, %s242_s20, %s243_s21  }
  0xa5   :  { %239 = dma.done.wait [#allocation4], 512  }
  0xa6   :  { %240 = vsyncadd [#allocation4], 4294966784 }
  0xa7   :  { %126 = vsyncpa [#allocation3], 1 }
  0xa8   :  { %127 = vsyncpa [#allocation6], 1 }
  0xa9   :  { %128 = vsyncpa [#allocation4], 1 }

</bundles_post_ra>
